<compile_context>
chip_gen: v7x
topology: tpu7x:2x2x1
jax: 0.10.0
libtpu: 0.0.40
codegen_flags: <defaults>
</compile_context>

<pallas_src>
import math
import functools

import jax
import jax.numpy as jnp
from jax.experimental import pallas as pl
from jax.experimental.pallas import tpu as pltpu

_EPS = 1e-12  # torch.nn.functional.normalize default eps


def _round_up(x, m):
    return ((x + m - 1) // m) * m


def _cdiv(a, b):
    return (a + b - 1) // b


def _vmem_need_bytes(B, D, tile_n, w_itemsize):
    """Approximate per-kernel VMEM footprint (double-buffered streamed operands
    + resident x / label blocks), used for the tile-size guard and to size
    vmem_limit_bytes."""
    w_bufs = 2 * D * tile_n * w_itemsize              # double-buffered W tiles
    out_bufs = 2 * max(B, 8) * tile_n * 4             # double-buffered output tiles
    winv_bufs = 2 * 8 * tile_n * 4                    # (1, tile_n) sublane-padded
    x_bufs = 2 * max(B, 8) * _round_up(D, 128) * 4    # resident x
    label_bufs = 2 * max(B, 8) * 128 * 4              # resident labels (lane pad)
    return w_bufs + out_bufs + winv_bufs + x_bufs + label_bufs


def _select_tiling(B, D, N, w_itemsize, tile_n=None, target_w_tile_bytes=4 << 20):
    n128 = _round_up(N, 128)
    if tile_n is None:
        # Byte-targeted tile width: ~4 MiB of W per tile regardless of D, so the
        # per-step DMA dwarfs the ~0.35 us grid-step overhead on every generation.
        tile_n = max((target_w_tile_bytes // (D * w_itemsize)) // 128 * 128, 128)
    tile_n = min(_round_up(int(tile_n), 128), n128)

    # VMEM guard: v7x has only 64 MiB per TensorCore (v5e/v6e have 128 MiB).
    try:
        info = pltpu.get_tpu_info()
        vmem_cap = int(getattr(info, "vmem_capacity_bytes", 64 << 20))
    except Exception:
        vmem_cap = 64 << 20
    budget = (3 * vmem_cap) // 8
    while tile_n > 128 and _vmem_need_bytes(B, D, tile_n, w_itemsize) > budget:
        tile_n = _round_up(max(tile_n // 2, 128), 128)

    # Keep >= 2 tiles when the class axis allows it (megacore "parallel" axis),
    # then rebalance so padding is at most ~one 128-column block rather than
    # rounding N all the way up to a multiple of tile_n.
    min_tiles = 2 if n128 >= 256 else 1
    grid_n = max(_cdiv(n128, tile_n), min_tiles)
    tile_n = _round_up(_cdiv(n128, grid_n), 128)
    grid_n = _cdiv(n128, tile_n)
    n_pad = grid_n * tile_n

    need = _vmem_need_bytes(B, D, tile_n, w_itemsize)
    vmem_limit = int(min(max(2 * need, 16 << 20), (3 * vmem_cap) // 4))
    return tile_n, grid_n, n_pad, vmem_limit


def arcface_kernel(x_ref, w_ref, winv_ref, label_ref, out_ref, *,
                   scale, cos_m, sin_m, th, mm, easy_margin, ls_eps,
                   out_features, tile_n):
    # x stays resident in VMEM across all class tiles (constant index_map);
    # re-normalizing it here is a handful of VALU/XLU/EUP ops per tile,
    # negligible next to the W DMA / MXU work (see module header on why it is
    # not hoisted into a pl.when-guarded scratch).
    x = x_ref[...].astype(jnp.float32)                                # (B, D)
    xn = x * jax.lax.rsqrt(
        jnp.maximum(jnp.sum(x * x, axis=-1, keepdims=True), _EPS * _EPS))

    # Un-normalized-W matmul; the per-class 1/||w_c|| is applied to the OUTPUT
    # (B*TILE_N muls) -- column scaling commutes with the left matmul, so this
    # is identical to normalizing the whole W tile (D*TILE_N muls) first.
    w = w_ref[...]                                                    # (D, TILE_N)
    raw = jax.lax.dot_general(
        xn.astype(w.dtype), w,
        dimension_numbers=(((1,), (0,)), ((), ())),
        preferred_element_type=jnp.float32)
    cosine = raw * winv_ref[...]                                      # (1,TILE_N) bcast

    # Clamp: f32 rounding can push |cosine| a ULP past 1.0 -> NaN in sqrt.
    sine = jnp.sqrt(jnp.maximum(1.0 - cosine * cosine, 0.0))
    phi = cosine * cos_m - sine * sin_m
    if easy_margin:
        phi = jnp.where(cosine > 0.0, phi, cosine)
    else:
        phi = jnp.where(cosine > th, phi, cosine - mm)

    # One-hot via iota compare, offset by this tile's global column origin.
    col0 = pl.program_id(0) * tile_n
    class_ids = jax.lax.broadcasted_iota(jnp.int32, cosine.shape, 1) + col0
    is_target = class_ids == label_ref[...]                           # (B, TILE_N)

    if ls_eps > 0.0:
        one_hot = (1.0 - ls_eps) * is_target.astype(jnp.float32) + ls_eps / out_features
        output = one_hot * phi + (1.0 - one_hot) * cosine
    else:
        output = jnp.where(is_target, phi, cosine)

    out_ref[...] = (output * scale).astype(out_ref.dtype)


def prepare_arcface_weight(weight, n_pad, *, stream_weight_bf16=False):
    """Single pass over W: transposed (in_features, n_pad) streaming layout
    (classes on lanes) plus per-class inverse norms.  Cache the result across
    steps when the weight is static; under the jitted convenience wrapper the
    transpose / pad / norm fuse into one HBM pass."""
    N, D = weight.shape
    w32 = weight.astype(jnp.float32)
    winv = jax.lax.rsqrt(jnp.maximum(jnp.sum(w32 * w32, axis=1), _EPS * _EPS))
    w_dn = w32.T
    if n_pad != N:
        w_dn = jnp.pad(w_dn, ((0, 0), (0, n_pad - N)))
        winv = jnp.pad(winv, (0, n_pad - N))        # zero => padded cosine == 0
    if stream_weight_bf16:
        w_dn = w_dn.astype(jnp.bfloat16)
    return w_dn, winv.reshape(1, n_pad)


def _arcface_pallas(x, w_dn, winv, label, *, scale, cos_m, sin_m, th, mm,
                    easy_margin, ls_eps, out_features, tile_n, grid_n,
                    vmem_limit_bytes):
    B, D = x.shape
    n_pad = w_dn.shape[1]
    label2d = label.reshape(B, 1).astype(jnp.int32)

    kernel = functools.partial(
        arcface_kernel,
        scale=scale, cos_m=cos_m, sin_m=sin_m, th=th, mm=mm,
        easy_margin=easy_margin, ls_eps=ls_eps,
        out_features=out_features, tile_n=tile_n)

    return pl.pallas_call(
        kernel,
        out_shape=jax.ShapeDtypeStruct((B, n_pad), jnp.float32),
        grid=(grid_n,),
        in_specs=[
            pl.BlockSpec((B, D), lambda j: (0, 0)),        # x: resident
            pl.BlockSpec((D, tile_n), lambda j: (0, j)),   # W tile streams in
            pl.BlockSpec((1, tile_n), lambda j: (0, j)),   # 1/||w_c|| per class
            pl.BlockSpec((B, 1), lambda j: (0, 0)),        # labels: resident
        ],
        out_specs=pl.BlockSpec((B, tile_n), lambda j: (0, j)),
        compiler_params=pltpu.CompilerParams(
            dimension_semantics=("parallel",),             # shard class tiles across TCs
            vmem_limit_bytes=vmem_limit_bytes,             # sized to need, not physical
        ),
    )(x, w_dn, winv, label2d)


@functools.partial(jax.jit, static_argnames=(
    "scale", "margin", "easy_margin", "ls_eps", "tile_n", "stream_weight_bf16"))
def arc_margin_product(x, weight, label, *, scale=30.0, margin=0.5,
                       easy_margin=False, ls_eps=0.0, tile_n=None,
                       stream_weight_bf16=False):
    """x: (B, in_features) f32, weight: (out_features, in_features) f32,
    label: (B,) int  ->  (B, out_features) f32 ArcFace logits."""
    B, D = x.shape
    N, D2 = weight.shape
    assert D == D2

    w_itemsize = 2 if stream_weight_bf16 else 4
    tile_n_, grid_n, n_pad, vmem_limit = _select_tiling(
        B, D, N, w_itemsize, tile_n=tile_n)

    # TODO(synk): in a training loop where `weight` is reused across many
    # batches, call prepare_arcface_weight once and cache (w_dn, winv) instead
    # of re-materializing the streaming layout every step.
    w_dn, winv = prepare_arcface_weight(
        weight, n_pad, stream_weight_bf16=stream_weight_bf16)

    cos_m = math.cos(margin)
    sin_m = math.sin(margin)
    th = math.cos(math.pi - margin)
    mm = math.sin(math.pi - margin) * margin

    out = _arcface_pallas(
        x, w_dn, winv, label,
        scale=float(scale), cos_m=cos_m, sin_m=sin_m, th=th, mm=mm,
        easy_margin=easy_margin, ls_eps=float(ls_eps),
        out_features=N, tile_n=tile_n_, grid_n=grid_n,
        vmem_limit_bytes=vmem_limit)

    # Minimal-padding policy keeps this slice (extra B*N read+write) tiny; it
    # disappears entirely when N is already a multiple of 128.
    return out[:, :N] if n_pad != N else out


def _reference(x, weight, label, *, scale=30.0, margin=0.5,
               easy_margin=False, ls_eps=0.0):
    eps = 1e-12
    xn = x / jnp.maximum(jnp.linalg.norm(x, axis=-1, keepdims=True), eps)
    wn = weight / jnp.maximum(jnp.linalg.norm(weight, axis=-1, keepdims=True), eps)
    cosine = xn @ wn.T
    sine = jnp.sqrt(jnp.maximum(1.0 - cosine ** 2, 0.0))
    cos_m, sin_m = math.cos(margin), math.sin(margin)
    th = math.cos(math.pi - margin)
    mm = math.sin(math.pi - margin) * margin
    phi = cosine * cos_m - sine * sin_m
    if easy_margin:
        phi = jnp.where(cosine > 0, phi, cosine)
    else:
        phi = jnp.where(cosine > th, phi, cosine - mm)
    one_hot = jax.nn.one_hot(label, weight.shape[0], dtype=jnp.float32)
    if ls_eps > 0:
        one_hot = (1 - ls_eps) * one_hot + ls_eps / weight.shape[0]
    return (one_hot * phi + (1.0 - one_hot) * cosine) * scale


if __name__ == "__main__":
    key = jax.random.PRNGKey(0)

    # --- Test 1: standard ArcFace config (module defaults) -----------------
    B, in_features, out_features = 8, 32, 128
    k1, k2, k3, k4, k5, k6 = jax.random.split(key, 6)

    x = jax.random.normal(k1, (B, in_features), dtype=jnp.float32)
    bound = math.sqrt(6.0 / (in_features + out_features))  # xavier_uniform_
    weight = jax.random.uniform(k2, (out_features, in_features),
                                dtype=jnp.float32, minval=-bound, maxval=bound)
    label = jax.random.randint(k3, (B,), 0, out_features, dtype=jnp.int32)

    out = arc_margin_product(x, weight, label, scale=30.0, margin=0.5,
                             easy_margin=False, ls_eps=0.0)
    out = jax.block_until_ready(out)
    ref = _reference(x, weight, label, scale=30.0, margin=0.5,
                     easy_margin=False, ls_eps=0.0)
    assert out.shape == (B, out_features)
    assert jnp.allclose(out, ref, atol=1e-4, rtol=1e-4), "mismatch vs reference (test 1)"

    # --- Test 2: non-128-multiple class count + label smoothing (2 tiles) --
    B2, D2, N2 = 16, 32, 200
    x2 = jax.random.normal(k4, (B2, D2), dtype=jnp.float32)
    bound2 = math.sqrt(6.0 / (D2 + N2))
    weight2 = jax.random.uniform(k5, (N2, D2), dtype=jnp.float32,
                                 minval=-bound2, maxval=bound2)
    label2 = jax.random.randint(k6, (B2,), 0, N2, dtype=jnp.int32)

    out2 = arc_margin_product(x2, weight2, label2, scale=30.0, margin=0.5,
                              easy_margin=False, ls_eps=0.1)
    out2 = jax.block_until_ready(out2)
    ref2 = _reference(x2, weight2, label2, scale=30.0, margin=0.5,
                      easy_margin=False, ls_eps=0.1)
    assert out2.shape == (B2, N2)
    assert jnp.allclose(out2, ref2, atol=1e-4, rtol=1e-4), "mismatch vs reference (test 2)"

    # --- Test 3: easy_margin branch + explicit tile_n override -------------
    out3 = arc_margin_product(x, weight, label, scale=30.0, margin=0.5,
                              easy_margin=True, ls_eps=0.0, tile_n=128)
    out3 = jax.block_until_ready(out3)
    ref3 = _reference(x, weight, label, scale=30.0, margin=0.5,
                      easy_margin=True, ls_eps=0.0)
    assert jnp.allclose(out3, ref3, atol=1e-4, rtol=1e-4), "mismatch vs reference (test 3)"

    print("KERNEL_OK")
</pallas_src>

<mosaic_0001>
module attributes {stable_mosaic.version = 11 : i64} {
  func.func @arcface_kernel(%arg0: i32, %arg1: memref<8x32xf32, #tpu.memory_space<vmem>>, %arg2: memref<32x128xf32, #tpu.memory_space<vmem>>, %arg3: memref<1x128xf32, #tpu.memory_space<vmem>>, %arg4: memref<8x1xi32, #tpu.memory_space<vmem>>, %arg5: memref<8x128xf32, #tpu.memory_space<vmem>>) attributes {dimension_semantics = [#tpu.dimension_semantics<parallel>], iteration_bounds = array<i64: 1>, scalar_prefetch = 0 : i64, scratch_operands = 0 : i64, tpu.core_type = #tpu.core_type<tc>, window_params = [{pipeline_mode = #tpu.pipeline_mode<synchronous>, transform_indices = @transform_0, window_bounds = array<i64: 8, 32>}, {transform_indices = @transform_1, window_bounds = array<i64: 32, 128>}, {transform_indices = @transform_2, window_bounds = array<i64: 1, 128>}, {pipeline_mode = #tpu.pipeline_mode<synchronous>, transform_indices = @transform_3, window_bounds = array<i64: 8, 1>}, {transform_indices = @transform_4, window_bounds = array<i64: 8, 128>}]} {
    %c0 = arith.constant 0 : index
    %c0_0 = arith.constant 0 : index
    %0 = vector.load %arg1[%c0, %c0_0] : memref<8x32xf32, #tpu.memory_space<vmem>>, vector<8x32xf32>
    %1 = arith.mulf %0, %0 : vector<8x32xf32>
    %cst = arith.constant dense<0.000000e+00> : vector<8xf32>
    %2 = vector.multi_reduction <add>, %1, %cst [1] : vector<8x32xf32> to vector<8xf32>
    %3 = vector.shape_cast %2 : vector<8xf32> to vector<8x1xf32>
    %cst_1 = arith.constant 1.000000e-24 : f32
    %4 = vector.broadcast %cst_1 : f32 to vector<8x1xf32>
    %5 = arith.maximumf %3, %4 : vector<8x1xf32>
    %6 = math.rsqrt %5 : vector<8x1xf32>
    %7 = vector.broadcast %6 : vector<8x1xf32> to vector<8x32xf32>
    %8 = arith.mulf %0, %7 : vector<8x32xf32>
    %c0_2 = arith.constant 0 : index
    %c0_3 = arith.constant 0 : index
    %9 = vector.load %arg2[%c0_2, %c0_3] : memref<32x128xf32, #tpu.memory_space<vmem>>, vector<32x128xf32>
    %cst_4 = arith.constant dense<0.000000e+00> : vector<8x128xf32>
    %10 = tpu.matmul %8, %9, %cst_4 {dimension_numbers = #tpu.dot_dimension_numbers<[1], [0], [0], [1], [0, 0, 1, 1], [], []>} : vector<8x32xf32>, vector<32x128xf32>, vector<8x128xf32> -> vector<8x128xf32>
    %c0_5 = arith.constant 0 : index
    %c0_6 = arith.constant 0 : index
    %11 = vector.load %arg3[%c0_5, %c0_6] : memref<1x128xf32, #tpu.memory_space<vmem>>, vector<1x128xf32>
    %12 = vector.broadcast %11 : vector<1x128xf32> to vector<8x128xf32>
    %13 = arith.mulf %10, %12 : vector<8x128xf32>
    %14 = arith.mulf %13, %13 : vector<8x128xf32>
    %cst_7 = arith.constant 1.000000e+00 : f32
    %15 = vector.broadcast %cst_7 : f32 to vector<8x128xf32>
    %16 = arith.subf %15, %14 : vector<8x128xf32>
    %cst_8 = arith.constant 0.000000e+00 : f32
    %17 = vector.broadcast %cst_8 : f32 to vector<8x128xf32>
    %18 = arith.maximumf %16, %17 : vector<8x128xf32>
    %19 = math.sqrt %18 : vector<8x128xf32>
    %cst_9 = arith.constant 0.87758255 : f32
    %20 = vector.broadcast %cst_9 : f32 to vector<8x128xf32>
    %21 = arith.mulf %13, %20 : vector<8x128xf32>
    %cst_10 = arith.constant 0.47942555 : f32
    %22 = vector.broadcast %cst_10 : f32 to vector<8x128xf32>
    %23 = arith.mulf %19, %22 : vector<8x128xf32>
    %24 = arith.subf %21, %23 : vector<8x128xf32>
    %cst_11 = arith.constant -0.87758255 : f32
    %25 = vector.broadcast %cst_11 : f32 to vector<8x128xf32>
    %26 = arith.cmpf ogt, %13, %25 : vector<8x128xf32>
    %cst_12 = arith.constant 0.239712775 : f32
    %27 = vector.broadcast %cst_12 : f32 to vector<8x128xf32>
    %28 = arith.subf %13, %27 : vector<8x128xf32>
    %29 = arith.select %26, %24, %28 : vector<8x128xi1>, vector<8x128xf32>
    %c128_i32 = arith.constant 128 : i32
    %30 = arith.muli %arg0, %c128_i32 : i32
    %31 = tpu.iota {dimensions = array<i32: 1>} : vector<8x128xi32>
    %32 = vector.broadcast %30 : i32 to vector<8x128xi32>
    %33 = arith.addi %31, %32 : vector<8x128xi32>
    %c0_13 = arith.constant 0 : index
    %c0_14 = arith.constant 0 : index
    %34 = vector.load %arg4[%c0_13, %c0_14] : memref<8x1xi32, #tpu.memory_space<vmem>>, vector<8x1xi32>
    %35 = vector.broadcast %34 : vector<8x1xi32> to vector<8x128xi32>
    %36 = arith.cmpi eq, %33, %35 : vector<8x128xi32>
    %37 = arith.select %36, %29, %13 : vector<8x128xi1>, vector<8x128xf32>
    %cst_15 = arith.constant 3.000000e+01 : f32
    %38 = vector.broadcast %cst_15 : f32 to vector<8x128xf32>
    %39 = arith.mulf %37, %38 : vector<8x128xf32>
    %c0_16 = arith.constant 0 : index
    %c0_17 = arith.constant 0 : index
    %40 = vector.load %arg5[%c0_16, %c0_17] : memref<8x128xf32, #tpu.memory_space<vmem>>, vector<8x128xf32>
    tpu.vector_store %arg5[%c0_16, %c0_17], %39 {strides = array<i32>} : memref<8x128xf32, #tpu.memory_space<vmem>>, vector<8x128xf32>,
    return
  }
  func.func @transform_0(%arg0: i32) -> (i32, i32) {
    %c0_i32 = arith.constant 0 : i32
    %c0_i32_0 = arith.constant 0 : i32
    %c0_i32_1 = arith.constant 0 : i32
    return %c0_i32, %c0_i32_0 : i32, i32
  }
  func.func @transform_1(%arg0: i32) -> (i32, i32) {
    %c0_i32 = arith.constant 0 : i32
    %c0_i32_0 = arith.constant 0 : i32
    return %c0_i32, %arg0 : i32, i32
  }
  func.func @transform_2(%arg0: i32) -> (i32, i32) {
    %c0_i32 = arith.constant 0 : i32
    %c0_i32_0 = arith.constant 0 : i32
    return %c0_i32, %arg0 : i32, i32
  }
  func.func @transform_3(%arg0: i32) -> (i32, i32) {
    %c0_i32 = arith.constant 0 : i32
    %c0_i32_0 = arith.constant 0 : i32
    %c0_i32_1 = arith.constant 0 : i32
    return %c0_i32, %c0_i32_0 : i32, i32
  }
  func.func @transform_4(%arg0: i32) -> (i32, i32) {
    %c0_i32 = arith.constant 0 : i32
    %c0_i32_0 = arith.constant 0 : i32
    return %c0_i32, %arg0 : i32, i32
  }
}

</mosaic_0001>

<bundles_post_ra>
// kernel: arc_margin_product.1
= control target key start
LH: loop header
LB: loop body
LE: loop exit
PB: predicated region body
PF: predicated region fallthrough
CT: control target
= control target key end

     0   :  { %vm20_vm0 = vcmask 261120   ;;  %s279_s0 = inlined_call_operand.vmem [shape: f32[8,32], index: 0, kind: input, shape index: {}]   ;;  %s280_s1 = inlined_call_operand.vmem [shape: f32[32,128], index: 1, kind: input, shape index: {}]   ;;  %s281_s2 = inlined_call_operand.vmem [shape: f32[1,128], index: 2, kind: input, shape index: {}]   ;;  %s282_s3 = inlined_call_operand.vmem [shape: s32[8,1], index: 3, kind: input, shape index: {}]   ;;  %s283_s4 = inlined_call_operand.hbm [shape: f32[8,128], index: 4, kind: output, shape index: {}]  }
   0x1   :  { %v18_v0 = vld [vmem:[%s279_s0] sm:$0xff] }
   0x2   :  { %9 = vsyncpa [#allocation3], 0  ;;  %v19_v1 = vmul.f32 %v18_v0, %v18_v0  ;;  %v27_v3 = vld [vmem:[%s280_s1] sm:$0xff]  ;;  %v28_v4 = vld [vmem:[%s280_s1 + $0x8] sm:$0xff]  ;;  %v214_v6 = vmov 0.0|0.0   ;;  %vm215_vm1 = vmmov 0   ;;  %v129_v24 = vlaneseq }
   0x3   :  { %v29_v5 = vld [vmem:[%s280_s1 + $0x10] sm:$0xff]  ;;  %174 = vmatprep.subr.bf16.mxu0 %v214_v6  ;;  %v175_v7 = vpack.c.bf16 %v28_v4, %v27_v3  ;;  %v30_v8 = vld [vmem:[%s280_s1 + $0x18] sm:$0xff]  ;;  %v216_v9 = vmov 0.0   ;;  %v133_v11 = vld [vmem:[%s282_s3] sm:$0xff]  ;;  %v217_v12 = vmov 0  }
   0x4   :  { %v21_v2 = vsel %vm20_vm0, %v19_v1, 0.0  ;;  %171 = vmatprep.mubr.msk.f32.mxu0 %vm215_vm1, %v216_v9  ;;  %v178_v10 = vpack.c.bf16 %v30_v8, %v29_v5  ;;  %185 = vset.pattern.permute.xlu0 %v217_v12  ;;  %v156_v17 = vld [vmem:[%s281_s2] ss:$0 sm:$0xff]  ;;  %v130_v28 = vand.u32 127, %v129_v24  ;;  %s218_s2 = smov [#allocation2]  }
   0x5   :  { %22 = vadd.xlane.f32.xlu0 %v21_v2  ;;  %176 = vmatpush3.bf16.msra.mxu0 %v175_v7  ;;  %s147_s3 = sshll.u32 %s218_s2, 4  ;;  %s148_s3 = int_to_ptr.vmem [resolvable:$true] %s147_s3 }
   0x6   :  { %177 = vmatprep.subr.bf16.mxu0 %v214_v6  ;;  %s190_s27 = scalar_lea.vmem %s148_s3, 128  ;;  %p195_p1 = scmp.lt.s32.totalorder %s148_s3, %s148_s3 }
   0x7   :  { %p191_p0 = scmp.ne.s32.totalorder %s148_s3, %s190_s27  ;;  %p196_p2 = scmp.lt.s32.totalorder %s190_s27, %s190_s27 }
   0x9   :  { %179 = vmatpush3.bf16.msra.mxu0 %v178_v10  ;;  %p197_p3 = por %p196_p2, %p195_p1 }
   0xb   :  { %p198_p4 = pnand %p197_p3, %p191_p0 }
  0x1b   :  { %135 = vperm.xlu0 %185, %v133_v11  }
  0x92   :  { %v23_v13 = vpop.xlane.xlu0 %22 }
  0x93   :  { %v24_v14 = vmax.f32 %v23_v13, 1e-24 }
  0x95   :  { %186 = vrsqrt.f32 %v24_v14 }
  0x9a   :  { %v136_v30 = vpop.permute.xlu0 %135 }
  0x9b   :  { %vm137_vm4 = vcmp.eq.s32.totalorder %v130_v28, %v136_v30 }
  0x9f   :  { %v187_v15 = vpop.eup %186 }
  0xa0   :  { %v26_v16 = vmul.f32 %v187_v15, %v18_v0 }
  0xa2   :  { %172 = vmatmul.mubr.msk.f32.vlgmr.msra.gmra.mrb[0].mxu0 %vm20_vm0, %v26_v16 }
 0x175   :  { %v100_v18 = vpop.f32.mrb[0].mxu0 }
 0x176   :  { %v111_v19 = vmul.f32 %v156_v17, %v100_v18  ;;  %v173_v20 = vpop.f32.mrb[1].mxu0 }
 0x178   :  { %v112_v21 = vmul.f32 %v111_v19, %v111_v19  ;;  %v122_v32 = vmul.f32 0.87758255, %v111_v19  ;;  %v157_v35 = vadd.f32 -0.23971277, %v111_v19  ;;  %vm125_vm5 = vcmp.gt.f32.partialorder %v111_v19, -0.87758255 }
 0x17a   :  { %v113_v22 = vsub.f32 1.0, %v112_v21 }
 0x17c   :  { %v114_v23 = vmax.f32 %v113_v22, 0.0 }
 0x17e   :  { %188 = vrsqrt.f32 %v114_v23  ;;  %vm117_vm2 = vcmp.eq.f32.partialorder %v114_v23, inf  ;;  %v120_v27 = vand.u32 2147483648, %v114_v23  ;;  %vm119_vm3 = vcmp.eq.f32.partialorder %v114_v23, 0.0 }
 0x188   :  { %v189_v25 = vpop.eup %188 }
 0x189   :  { %v116_v26 = vmul.f32 %v189_v25, %v114_v23 }
 0x18b   :  { %v118_v29 = vsel %vm117_vm2, %v114_v23, %v116_v26 }
 0x18c   :  { %v121_v31 = vsel %vm119_vm3, %v120_v27, %v118_v29 }
 0x18d   :  { %v123_v33 = vmul.f32 0.47942555, %v121_v31 }
 0x18f   :  { %v124_v34 = vsub.f32 %v122_v32, %v123_v33 }
 0x191   :  { %v127_v36 = vsel %vm125_vm5, %v124_v34, %v157_v35 }
 0x192   :  { %v138_v37 = vsel %vm137_vm4, %v127_v36, %v111_v19 }
 0x193   :  { %v139_v38 = vmul.f32 30.0, %v138_v37 }
 0x195   :  { %140 = vst [vmem:[#allocation2] sm:$0xff] %v139_v38 }
 0x196   :  { %201 = shalt.err (!%p198_p4)
}
 0x197   :  { %s202_s30 = scalar_lea.hbm %s283_s4, 128 }
 0x198   :  { %p203_p5 = scmp.ne.s32.totalorder %s283_s4, %s202_s30  ;;  %p206_p6 = scmp.lt.u32.totalorder %s202_s30, %s283_s4 }
 0x19a   :  { %p208_p7 = pnand %p206_p6, %p203_p5 }
 0x19c   :  { %211 = shalt.err (!%p208_p7)
}
 0x19d   :  { %150 = dma.vmem_to_hbm [thread:$0]  %s148_s3, 128, %s283_s4, [#allocation3]  }
 0x19e   :  { %212 = dma.done.wait [#allocation3], 128  }
 0x19f   :  { %213 = vsyncadd [#allocation3], 4294967168 }
 0x1a0   :  { %154 = vsyncpa [#allocation3], 1 }

</bundles_post_ra>
